<compile_context>
chip_gen: v5e
topology: v5e:2x2
jax: 0.10.0
libtpu: 0.0.40
codegen_flags: <defaults>
</compile_context>

<pallas_src>
import functools

import jax
import jax.numpy as jnp
from jax import lax
from jax.experimental import pallas as pl
from jax.experimental.pallas import tpu as pltpu

EPS = 1e-5                       # nn.LayerNorm default
_LANE = 128
_VMEM_LIMIT_BYTES = 48 * 1024 * 1024   # < 64 MiB (v7x physical), > v5e/v6e defaults
_VMEM_TILE_BUDGET = 40 * 1024 * 1024   # working-set target used to size the row tile


def _round_up(x, m):
    return (x + m - 1) // m * m


def _patch_merge_kernel(x_ref, w_ref, gamma_ref, beta_ref, o_ref, *, n_valid):
    # x_ref: (tm, 4C) compute dtype; w_ref: (4C, Np); gamma/beta: (1, Np) f32.
    y = jnp.dot(x_ref[...], w_ref[...], preferred_element_type=jnp.float32)
    n_pad = y.shape[-1]
    if n_pad == n_valid:
        mean = jnp.mean(y, axis=-1, keepdims=True)
        centered = y - mean
        var = jnp.mean(centered * centered, axis=-1, keepdims=True)
    else:
        # Padded output lanes of y are exactly zero (weight columns were
        # zero-padded), so plain sums over the padded width equal sums over
        # the real channels; mask only the variance term.
        mean = jnp.sum(y, axis=-1, keepdims=True) / n_valid
        lane = lax.broadcasted_iota(jnp.int32, y.shape, 1)
        centered = jnp.where(lane < n_valid, y - mean, 0.0)
        var = jnp.sum(centered * centered, axis=-1, keepdims=True) / n_valid
    y_norm = (y - mean) * lax.rsqrt(var + EPS)
    out = y_norm * gamma_ref[...] + beta_ref[...]     # padded lanes -> 0
    o_ref[...] = out.astype(o_ref.dtype)


def patch_merging(x, conv_w, gamma, beta, *, tm=512, compute_dtype=jnp.bfloat16):
    """x: (B, H, W, C). conv_w: (2C, C, 2, 2). gamma/beta: (2C,)."""
    B, H, W, C = x.shape
    out_dtype = x.dtype
    N = 2 * C
    K = 4 * C
    if compute_dtype is None:
        compute_dtype = x.dtype

    # ---- patch extraction (plain-JAX glue) --------------------------------
    # Cast first so the XLA-side gather copy also moves half the bytes.
    x = x.astype(compute_dtype)
    # F.pad(x, (0, 0, 0, W % 2, 0, H % 2)): pad W on the right, H at the bottom.
    x = jnp.pad(x, ((0, 0), (0, H % 2), (0, W % 2), (0, 0)))
    Hp, Wp = x.shape[1], x.shape[2]
    H2, W2 = Hp // 2, Wp // 2
    x = x.reshape(B, H2, 2, W2, 2, C).transpose(0, 1, 3, 2, 4, 5)
    patches = x.reshape(B * H2 * W2, K)               # feature order (kh, kw, c)
    # TODO(synk): for C % 128 == 0 this gather copy can be fused into the
    # kernel (four in_specs over the (B*H2, 2, W2, 2, C) view with kh/kw as
    # pl.Squeezed() dims, summed as four matmuls), roughly halving HBM
    # traffic; at small C (as in this test config) the in-kernel lane concat
    # is not layout-clean, so the XLA-side gather is kept.

    # conv_w[oc, c, kh, kw] -> w_mat[(kh, kw, c), oc]
    w_mat = conv_w.transpose(2, 3, 1, 0).reshape(K, N).astype(compute_dtype)

    # ---- lane-dense output: pad N up to a full 128-lane vreg when needed --
    Np = N if N >= _LANE else _LANE
    if Np != N:
        w_mat = jnp.pad(w_mat, ((0, 0), (0, Np - N)))
        gamma = jnp.pad(gamma, (0, Np - N))
        beta = jnp.pad(beta, (0, Np - N))
    gamma2 = gamma.reshape(1, Np).astype(jnp.float32)
    beta2 = beta.reshape(1, Np).astype(jnp.float32)

    # ---- row tiling --------------------------------------------------------
    M = patches.shape[0]
    tm = _round_up(max(tm, 8), 8)
    tm_eff = min(tm, _round_up(M, 8))          # single step for tiny inputs

    def _vmem_need(t):
        # conservative: assume everything is double-buffered.
        in_b = t * K * jnp.dtype(compute_dtype).itemsize
        out_b = t * Np * jnp.dtype(out_dtype).itemsize
        w_b = K * Np * jnp.dtype(compute_dtype).itemsize
        gb_b = 2 * Np * 4
        return 2 * (in_b + out_b + w_b + gb_b)

    while tm_eff > 64 and _vmem_need(tm_eff) > _VMEM_TILE_BUDGET:
        tm_eff = _round_up(tm_eff // 2, 8)

    pad_m = (-M) % tm_eff
    if pad_m:
        patches = jnp.pad(patches, ((0, pad_m), (0, 0)))
    Mp = patches.shape[0]

    kernel = functools.partial(_patch_merge_kernel, n_valid=N)
    out = pl.pallas_call(
        kernel,
        out_shape=jax.ShapeDtypeStruct((Mp, Np), out_dtype),
        grid_spec=pltpu.PrefetchScalarGridSpec(
            num_scalar_prefetch=0,
            grid=(Mp // tm_eff,),
            in_specs=[
                pl.BlockSpec((tm_eff, K), lambda i: (i, 0)),
                pl.BlockSpec((K, Np), lambda i: (0, 0)),
                pl.BlockSpec((1, Np), lambda i: (0, 0)),
                pl.BlockSpec((1, Np), lambda i: (0, 0)),
            ],
            out_specs=pl.BlockSpec((tm_eff, Np), lambda i: (i, 0)),
        ),
        compiler_params=pltpu.CompilerParams(
            dimension_semantics=("parallel",),
            vmem_limit_bytes=_VMEM_LIMIT_BYTES),
    )(patches, w_mat, gamma2, beta2)

    return out[:M, :N].reshape(B, H2, W2, N)


def reference(x, conv_w, gamma, beta):
    """Pure-JAX reference matching the PyTorch forward (f32 throughout)."""
    B, H, W, C = x.shape
    x = jnp.pad(x, ((0, 0), (0, H % 2), (0, W % 2), (0, 0)))
    x_nchw = x.transpose(0, 3, 1, 2)
    y = lax.conv_general_dilated(
        x_nchw, conv_w, window_strides=(2, 2), padding="VALID",
        dimension_numbers=("NCHW", "OIHW", "NCHW"))
    y = y.transpose(0, 2, 3, 1)
    mean = jnp.mean(y, axis=-1, keepdims=True)
    var = jnp.mean((y - mean) ** 2, axis=-1, keepdims=True)
    return (y - mean) / jnp.sqrt(var + EPS) * gamma + beta


if __name__ == "__main__":
    B, H, W, C = 2, 16, 16, 4  # dim = 4

    key = jax.random.PRNGKey(0)
    kx, kw, kg, kb = jax.random.split(key, 4)
    x = jax.random.normal(kx, (B, H, W, C), dtype=jnp.float32)
    # Conv2d(dim, 2*dim, (2,2), (2,2), bias=False) weight: (2*dim, dim, 2, 2)
    conv_w = 0.1 * jax.random.normal(kw, (2 * C, C, 2, 2), dtype=jnp.float32)
    gamma = 1.0 + 0.1 * jax.random.normal(kg, (2 * C,), dtype=jnp.float32)
    beta = 0.1 * jax.random.normal(kb, (2 * C,), dtype=jnp.float32)

    ref = reference(x, conv_w, gamma, beta)

    # Default path: bf16 matmul inputs (f32 LayerNorm) -> loose tolerance.
    out_bf16 = jax.block_until_ready(patch_merging(x, conv_w, gamma, beta))
    assert out_bf16.shape == (B, H // 2, W // 2, 2 * C), out_bf16.shape
    assert jnp.allclose(out_bf16, ref, atol=1e-1, rtol=1e-1), (
        float(jnp.max(jnp.abs(out_bf16 - ref))))

    # f32 path: bit-accurate check against the reference.
    out_f32 = jax.block_until_ready(
        patch_merging(x, conv_w, gamma, beta, compute_dtype=jnp.float32))
    assert jnp.allclose(out_f32, ref, atol=1e-4, rtol=1e-4), (
        float(jnp.max(jnp.abs(out_f32 - ref))))

    # Odd H/W: exercises the F.pad path and the row-padding (pad_m) path.
    x2 = jax.random.normal(kx, (1, 7, 9, C), dtype=jnp.float32)
    ref2 = reference(x2, conv_w, gamma, beta)
    out2 = jax.block_until_ready(
        patch_merging(x2, conv_w, gamma, beta, compute_dtype=jnp.float32))
    assert out2.shape == (1, 4, 5, 2 * C), out2.shape
    assert jnp.allclose(out2, ref2, atol=1e-4, rtol=1e-4), (
        float(jnp.max(jnp.abs(out2 - ref2))))

    print("KERNEL_OK")
</pallas_src>

<mosaic_0001>
module attributes {stable_mosaic.version = 11 : i64} {
  func.func @_patch_merge_kernel(%arg0: i32, %arg1: memref<128x16xbf16, #tpu.memory_space<vmem>>, %arg2: memref<16x128xbf16, #tpu.memory_space<vmem>>, %arg3: memref<1x128xf32, #tpu.memory_space<vmem>>, %arg4: memref<1x128xf32, #tpu.memory_space<vmem>>, %arg5: memref<128x128xf32, #tpu.memory_space<vmem>>) attributes {dimension_semantics = [#tpu.dimension_semantics<parallel>], iteration_bounds = array<i64: 1>, scalar_prefetch = 0 : i64, scratch_operands = 0 : i64, tpu.core_type = #tpu.core_type<tc>, window_params = [{transform_indices = @transform_0, window_bounds = array<i64: 128, 16>}, {pipeline_mode = #tpu.pipeline_mode<synchronous>, transform_indices = @transform_1, window_bounds = array<i64: 16, 128>}, {pipeline_mode = #tpu.pipeline_mode<synchronous>, transform_indices = @transform_2, window_bounds = array<i64: 1, 128>}, {pipeline_mode = #tpu.pipeline_mode<synchronous>, transform_indices = @transform_3, window_bounds = array<i64: 1, 128>}, {transform_indices = @transform_4, window_bounds = array<i64: 128, 128>}]} {
    %c0 = arith.constant 0 : index
    %c0_0 = arith.constant 0 : index
    %0 = vector.load %arg1[%c0, %c0_0] : memref<128x16xbf16, #tpu.memory_space<vmem>>, vector<128x16xbf16>
    %c0_1 = arith.constant 0 : index
    %c0_2 = arith.constant 0 : index
    %1 = vector.load %arg2[%c0_1, %c0_2] : memref<16x128xbf16, #tpu.memory_space<vmem>>, vector<16x128xbf16>
    %cst = arith.constant dense<0.000000e+00> : vector<128x128xf32>
    %2 = tpu.matmul %0, %1, %cst {dimension_numbers = #tpu.dot_dimension_numbers<[1], [0], [0], [1], [0, 0, 1, 1], [], []>} : vector<128x16xbf16>, vector<16x128xbf16>, vector<128x128xf32> -> vector<128x128xf32>
    %cst_3 = arith.constant dense<0.000000e+00> : vector<128xf32>
    %3 = vector.multi_reduction <add>, %2, %cst_3 [1] : vector<128x128xf32> to vector<128xf32>
    %4 = vector.shape_cast %3 : vector<128xf32> to vector<128x1xf32>
    %cst_4 = arith.constant 8.000000e+00 : f32
    %5 = vector.broadcast %cst_4 : f32 to vector<128x1xf32>
    %6 = arith.divf %4, %5 : vector<128x1xf32>
    %7 = tpu.iota {dimensions = array<i32: 1>} : vector<128x128xi32>
    %c8_i32 = arith.constant 8 : i32
    %8 = vector.broadcast %c8_i32 : i32 to vector<128x128xi32>
    %9 = arith.cmpi slt, %7, %8 : vector<128x128xi32>
    %10 = vector.broadcast %6 : vector<128x1xf32> to vector<128x128xf32>
    %11 = arith.subf %2, %10 : vector<128x128xf32>
    %cst_5 = arith.constant 0.000000e+00 : f32
    %12 = vector.broadcast %cst_5 : f32 to vector<128x128xf32>
    %13 = arith.select %9, %11, %12 : vector<128x128xi1>, vector<128x128xf32>
    %14 = arith.mulf %13, %13 : vector<128x128xf32>
    %cst_6 = arith.constant dense<0.000000e+00> : vector<128xf32>
    %15 = vector.multi_reduction <add>, %14, %cst_6 [1] : vector<128x128xf32> to vector<128xf32>
    %16 = vector.shape_cast %15 : vector<128xf32> to vector<128x1xf32>
    %cst_7 = arith.constant 8.000000e+00 : f32
    %17 = vector.broadcast %cst_7 : f32 to vector<128x1xf32>
    %18 = arith.divf %16, %17 : vector<128x1xf32>
    %19 = vector.broadcast %6 : vector<128x1xf32> to vector<128x128xf32>
    %20 = arith.subf %2, %19 : vector<128x128xf32>
    %cst_8 = arith.constant 9.99999974E-6 : f32
    %21 = vector.broadcast %cst_8 : f32 to vector<128x1xf32>
    %22 = arith.addf %18, %21 : vector<128x1xf32>
    %23 = math.rsqrt %22 : vector<128x1xf32>
    %24 = vector.broadcast %23 : vector<128x1xf32> to vector<128x128xf32>
    %25 = arith.mulf %20, %24 : vector<128x128xf32>
    %c0_9 = arith.constant 0 : index
    %c0_10 = arith.constant 0 : index
    %26 = vector.load %arg3[%c0_9, %c0_10] : memref<1x128xf32, #tpu.memory_space<vmem>>, vector<1x128xf32>
    %27 = vector.broadcast %26 : vector<1x128xf32> to vector<128x128xf32>
    %28 = arith.mulf %25, %27 : vector<128x128xf32>
    %c0_11 = arith.constant 0 : index
    %c0_12 = arith.constant 0 : index
    %29 = vector.load %arg4[%c0_11, %c0_12] : memref<1x128xf32, #tpu.memory_space<vmem>>, vector<1x128xf32>
    %30 = vector.broadcast %29 : vector<1x128xf32> to vector<128x128xf32>
    %31 = arith.addf %28, %30 : vector<128x128xf32>
    %c0_13 = arith.constant 0 : index
    %c0_14 = arith.constant 0 : index
    %32 = vector.load %arg5[%c0_13, %c0_14] : memref<128x128xf32, #tpu.memory_space<vmem>>, vector<128x128xf32>
    tpu.vector_store %arg5[%c0_13, %c0_14], %31 {strides = array<i32>} : memref<128x128xf32, #tpu.memory_space<vmem>>, vector<128x128xf32>,
    return
  }
  func.func @transform_0(%arg0: i32) -> (i32, i32) {
    %c0_i32 = arith.constant 0 : i32
    %c0_i32_0 = arith.constant 0 : i32
    return %arg0, %c0_i32 : i32, i32
  }
  func.func @transform_1(%arg0: i32) -> (i32, i32) {
    %c0_i32 = arith.constant 0 : i32
    %c0_i32_0 = arith.constant 0 : i32
    %c0_i32_1 = arith.constant 0 : i32
    return %c0_i32, %c0_i32_0 : i32, i32
  }
  func.func @transform_2(%arg0: i32) -> (i32, i32) {
    %c0_i32 = arith.constant 0 : i32
    %c0_i32_0 = arith.constant 0 : i32
    %c0_i32_1 = arith.constant 0 : i32
    return %c0_i32, %c0_i32_0 : i32, i32
  }
  func.func @transform_3(%arg0: i32) -> (i32, i32) {
    %c0_i32 = arith.constant 0 : i32
    %c0_i32_0 = arith.constant 0 : i32
    %c0_i32_1 = arith.constant 0 : i32
    return %c0_i32, %c0_i32_0 : i32, i32
  }
  func.func @transform_4(%arg0: i32) -> (i32, i32) {
    %c0_i32 = arith.constant 0 : i32
    %c0_i32_0 = arith.constant 0 : i32
    return %arg0, %c0_i32 : i32, i32
  }
}

</mosaic_0001>

<bundles_post_ra>
// kernel: tpu_custom_call.1
= control target key start
LH: loop header
LB: loop body
LE: loop exit
PB: predicated region body
PF: predicated region fallthrough
CT: control target
= control target key end

     0   :  { %vm83_vm0 = vcmask 130048   ;;  %s1072_s0 = inlined_call_operand.vmem [shape: bf16[128,16], index: 0, kind: input, shape index: {}]   ;;  %s1073_s1 = inlined_call_operand.vmem [shape: bf16[16,128], index: 1, kind: input, shape index: {}]   ;;  %s1074_s2 = inlined_call_operand.vmem [shape: f32[1,128], index: 2, kind: input, shape index: {}]   ;;  %s1075_s3 = inlined_call_operand.vmem [shape: f32[1,128], index: 3, kind: input, shape index: {}]   ;;  %s1076_s4 = inlined_call_operand.hbm [shape: f32[128,128], index: 4, kind: output, shape index: {}]  }
   0x1   :  { %v629_v0 = vld [vmem:[%s1073_s1] sm:$0xff]  ;;  %v623_v2 = vld [vmem:[%s1072_s0 + $0x10] sm:$0xff] }
   0x2   :  { %v621_v1 = vld [vmem:[%s1072_s0] sm:$0xff]  ;;  %115 = vmatpush.bf16.msra.mxu0 %v629_v0  ;;  %630 = vmatpush.bf16.msra.mxu1 %v629_v0  ;;  %v627_v4 = vld [vmem:[%s1072_s0 + $0x30] sm:$0xff] }
   0x3   :  { %v625_v3 = vld [vmem:[%s1072_s0 + $0x20] sm:$0xff]  ;;  %631 = vmatpush.bf16.msra.mxu2 %v629_v0  ;;  %632 = vmatpush.bf16.msra.mxu3 %v629_v0 }
   0x4   :  { %9 = vsyncpa [#allocation3], 0  ;;  %v622_v5 = vld [vmem:[%s1072_s0 + $0x8] sm:$0xff]  ;;  %v624_v6 = vld [vmem:[%s1072_s0 + $0x18] sm:$0xff]  ;;  %v699_v25 = vmov 8.0   ;;  %v212_v31 = vlaneseq  ;;  %s565_s11 = sshll.u32 %s1076_s4, 4  ;;  %s566_s11 = int_to_ptr.hbm [resolvable:$true] %s565_s11 }
   0x5   :  { %613 = vmatmul.msk.bf16.vlgmr.msra.gmra.mxu0 %vm83_vm0, %v621_v1  ;;  %615 = vmatmul.msk.bf16.vlgmr.msra.gmra.mxu1 %vm83_vm0, %v623_v2  ;;  %v626_v7 = vld [vmem:[%s1072_s0 + $0x28] sm:$0xff]  ;;  %v628_v8 = vld [vmem:[%s1072_s0 + $0x38] sm:$0xff]  ;;  %639 = vrcp.f32 %v699_v25  ;;  %s701_s12 = smov 128   ;;  %s702_s13 = smov 8  }
   0x6   :  { %617 = vmatmul.msk.bf16.vlgmr.msra.gmra.mxu2 %vm83_vm0, %v625_v3  ;;  %619 = vmatmul.msk.bf16.vlgmr.msra.gmra.mxu3 %vm83_vm0, %v627_v4  ;;  %v798_v33 = vand.u32 127, %v212_v31 }
   0x8   :  { %vm214_vm2 = vcmp.lt.s32.totalorder %v798_v33, 8 }
   0xb   :  { %v640_v26 = vpop.eup %639 }
   0xc   :  { %v190_v27 = vmul.f32 8.0, %v640_v26  ;;  %vm194_vm1 = vweird.f32 %v640_v26 }
   0xe   :  { %v191_v28 = vsub.f32 1.0, %v190_v27 }
  0x10   :  { %v192_v29 = vmul.f32 %v640_v26, %v191_v28 }
  0x12   :  { %v193_v30 = vadd.f32 %v640_v26, %v192_v29 }
  0x14   :  { %v796_v32 = vsel %vm194_vm1, %v640_v26, %v193_v30 }
  0x15   :  { %614 = vmatmul.msk.bf16.gmra.mxu0 %vm83_vm0, %v622_v5  ;;  %616 = vmatmul.msk.bf16.gmra.mxu1 %vm83_vm0, %v624_v6 }
  0x16   :  { %618 = vmatmul.msk.bf16.gmra.mxu2 %vm83_vm0, %v626_v7  ;;  %620 = vmatmul.msk.bf16.gmra.mxu3 %vm83_vm0, %v628_v8 }
  0x82   :  { %v117_v9 = vpop.f32.mrf.mxu0  ;;  %v127_v10 = vpop.f32.mrf.mxu1 }
  0x83   :  { %165 = vadd.xlane.f32.xlu2 %v127_v10  ;;  %157 = vadd.xlane.f32.xlu0 %v117_v9 }
  0x89   :  { %v137_v11 = vpop.f32.mrf.mxu2  ;;  %v147_v12 = vpop.f32.mrf.mxu3 }
  0x8a   :  { %v763_v13 = vpop.f32.mrf.mxu0  ;;  %v129_v16 = vpop.f32.mrf.mxu1 }
  0x8b   :  { %173 = vadd.xlane.f32.xlu2 %v137_v11  ;;  %181 = vadd.xlane.f32.xlu0 %v147_v12 }
  0x91   :  { %v765_v14 = vpop.f32.mrf.mxu2  ;;  %v767_v15 = vpop.f32.mrf.mxu3 }
  0x92   :  { %183 = vadd.xlane.f32.xlu1 %v767_v15  ;;  %v771_v17 = vpop.f32.mrf.mxu0  ;;  %v781_v21 = vpop.f32.mrf.mxu1 }
  0x93   :  { %167 = vadd.xlane.f32.xlu2 %v129_v16  ;;  %159 = vadd.xlane.f32.xlu0 %v763_v13 }
  0x99   :  { %v773_v18 = vpop.f32.mrf.mxu2  ;;  %v777_v19 = vpop.f32.mrf.mxu3 }
  0x9a   :  { %161 = vadd.xlane.f32.xlu1 %v771_v17  ;;  %v788_v23 = vpop.f32.mrf.mxu0  ;;  %v793_v24 = vpop.f32.mrf.mxu1 }
  0x9b   :  { %175 = vadd.xlane.f32.xlu0 %v765_v14 }
  0xa1   :  { %v779_v20 = vpop.f32.mrf.mxu2  ;;  %v786_v22 = vpop.f32.mrf.mxu3 }
  0xa2   :  { %179 = vadd.xlane.f32.xlu2 %v779_v20  ;;  %177 = vadd.xlane.f32.xlu1 %v773_v18 }
  0xa3   :  { %169 = vadd.xlane.f32.xlu0 %v781_v21 }
  0xaa   :  { %185 = vadd.xlane.f32.xlu2 %v777_v19  ;;  %163 = vadd.xlane.f32.xlu1 %v788_v23 }
  0xab   :  { %187 = vadd.xlane.f32.xlu0 %v786_v22 }
  0xb2   :  { %171 = vadd.xlane.f32.xlu1 %v793_v24 }
  0xf6   :  { %v166_v34 = vpop.xlane.xlu2 %165  ;;  %v158_v35 = vpop.xlane.xlu0 %157 }
  0xf7   :  { %v200_v36 = vmul.f32 %v796_v32, %v166_v34  ;;  %v196_v37 = vmul.f32 %v796_v32, %v158_v35 }
  0xf9   :  { %v803_v38 = vsub.f32 %v127_v10, %v200_v36  ;;  %v805_v39 = vsub.f32 %v117_v9, %v196_v37 }
  0xfb   :  { %v235_v40 = vsel %vm214_vm2, %v803_v38, 0.0  ;;  %v231_v41 = vsel %vm214_vm2, %v805_v39, 0.0 }
  0xfc   :  { %v251_v42 = vmul.f32 %v235_v40, %v235_v40  ;;  %v247_v43 = vmul.f32 %v231_v41, %v231_v41 }
  0xfe   :  { %v174_v44 = vpop.xlane.xlu2 %173  ;;  %271 = vadd.xlane.f32.xlu2 %v251_v42  ;;  %v182_v45 = vpop.xlane.xlu0 %181  ;;  %263 = vadd.xlane.f32.xlu1 %v247_v43 }
  0xff   :  { %v204_v46 = vmul.f32 %v796_v32, %v174_v44  ;;  %v208_v47 = vmul.f32 %v796_v32, %v182_v45 }
 0x101   :  { %v815_v48 = vsub.f32 %v137_v11, %v204_v46  ;;  %v817_v49 = vsub.f32 %v147_v12, %v208_v47 }
 0x103   :  { %v239_v50 = vsel %vm214_vm2, %v815_v48, 0.0  ;;  %v243_v51 = vsel %vm214_vm2, %v817_v49, 0.0 }
 0x104   :  { %v255_v52 = vmul.f32 %v239_v50, %v239_v50  ;;  %v259_v53 = vmul.f32 %v243_v51, %v243_v51 }
 0x105   :  { %v184_v54 = vpop.xlane.xlu1 %183 }
 0x106   :  { %v168_v55 = vpop.xlane.xlu2 %167  ;;  %279 = vadd.xlane.f32.xlu0 %v255_v52  ;;  %v160_v56 = vpop.xlane.xlu0 %159  ;;  %287 = vadd.xlane.f32.xlu1 %v259_v53 }
 0x107   :  { %v201_v57 = vmul.f32 %v796_v32, %v168_v55  ;;  %v197_v58 = vmul.f32 %v796_v32, %v160_v56 }
 0x109   :  { %v827_v59 = vsub.f32 %v129_v16, %v201_v57  ;;  %v830_v60 = vsub.f32 %v763_v13, %v197_v58 }
 0x10b   :  { %v236_v61 = vsel %vm214_vm2, %v827_v59, 0.0  ;;  %v232_v62 = vsel %vm214_vm2, %v830_v60, 0.0 }
 0x10c   :  { %v252_v63 = vmul.f32 %v236_v61, %v236_v61  ;;  %v248_v0 = vmul.f32 %v232_v62, %v232_v62 }
 0x10d   :  { %v162_v1 = vpop.xlane.xlu1 %161 }
 0x10e   :  { %v198_v2 = vmul.f32 %v796_v32, %v162_v1  ;;  %273 = vadd.xlane.f32.xlu0 %v252_v63  ;;  %265 = vadd.xlane.f32.xlu2 %v248_v0  ;;  %v176_v3 = vpop.xlane.xlu0 %175 }
 0x10f   :  { %v205_v4 = vmul.f32 %v796_v32, %v176_v3 }
 0x110   :  { %v841_v5 = vsub.f32 %v771_v17, %v198_v2 }
 0x111   :  { %v844_v6 = vsub.f32 %v765_v14, %v205_v4 }
 0x112   :  { %v233_v7 = vsel %vm214_vm2, %v841_v5, 0.0 }
 0x113   :  { %v240_v8 = vsel %vm214_vm2, %v844_v6, 0.0  ;;  %v249_v9 = vmul.f32 %v233_v7, %v233_v7 }
 0x114   :  { %v256_v10 = vmul.f32 %v240_v8, %v240_v8 }
 0x115   :  { %v180_v11 = vpop.xlane.xlu2 %179  ;;  %v178_v12 = vpop.xlane.xlu1 %177 }
 0x116   :  { %v207_v13 = vmul.f32 %v796_v32, %v180_v11  ;;  %v206_v16 = vmul.f32 %v796_v32, %v178_v12  ;;  %v170_v17 = vpop.xlane.xlu0 %169  ;;  %267 = vadd.xlane.f32.xlu0 %v249_v9  ;;  %281 = vadd.xlane.f32.xlu1 %v256_v10 }
 0x117   :  { %v202_v14 = vmul.f32 %v796_v32, %v170_v17 }
 0x118   :  { %v856_v25 = vsub.f32 %v779_v20, %v207_v13  ;;  %v859_v26 = vsub.f32 %v773_v18, %v206_v16 }
 0x119   :  { %v862_v27 = vsub.f32 %v781_v21, %v202_v14 }
 0x11a   :  { %v241_v28 = vsel %vm214_vm2, %v859_v26, 0.0  ;;  %v242_v29 = vsel %vm214_vm2, %v856_v25, 0.0 }
 0x11b   :  { %v257_v30 = vmul.f32 %v241_v28, %v241_v28  ;;  %v237_v20 = vsel %vm214_vm2, %v862_v27, 0.0  ;;  %v258_v31 = vmul.f32 %v242_v29, %v242_v29 }
 0x11c   :  { %v253_v34 = vmul.f32 %v237_v20, %v237_v20 }
 0x11d   :  { %v186_v18 = vpop.xlane.xlu2 %185  ;;  %283 = vadd.xlane.f32.xlu2 %v257_v30  ;;  %v164_v35 = vpop.xlane.xlu1 %163 }
 0x11e   :  { %v210_v21 = vmul.f32 %v796_v32, %v186_v18  ;;  %v199_v36 = vmul.f32 %v796_v32, %v164_v35  ;;  %v188_v37 = vpop.xlane.xlu0 %187  ;;  %285 = vadd.xlane.f32.xlu0 %v258_v31  ;;  %275 = vadd.xlane.f32.xlu1 %v253_v34 }
 0x11f   :  { %v211_v42 = vmul.f32 %v796_v32, %v188_v37  ;;  %v928_v37 = vld [vmem:[%s1074_s2] ss:$0 sm:$0xff]  ;;  %s700_s2 = smov [#allocation2]  }
 0x120   :  { %v876_v40 = vsub.f32 %v777_v19, %v210_v21  ;;  %v879_v41 = vsub.f32 %v788_v23, %v199_v36  ;;  %v209_v23 = vmul.f32 %v796_v32, %v184_v54 }
 0x121   :  { %v889_v47 = vsub.f32 %v786_v22, %v211_v42 }
 0x122   :  { %v245_v43 = vsel %vm214_vm2, %v876_v40, 0.0  ;;  %v234_v44 = vsel %vm214_vm2, %v879_v41, 0.0  ;;  %v903_v55 = vsub.f32 %v767_v15, %v209_v23 }
 0x123   :  { %v261_v45 = vmul.f32 %v245_v43, %v245_v43  ;;  %v250_v46 = vmul.f32 %v234_v44, %v234_v44  ;;  %v246_v52 = vsel %vm214_vm2, %v889_v47, 0.0 }
 0x124   :  { %v262_v56 = vmul.f32 %v246_v52, %v246_v52 }
 0x125   :  { %v172_v19 = vpop.xlane.xlu1 %171 }
 0x126   :  { %v203_v50 = vmul.f32 %v796_v32, %v172_v19  ;;  %291 = vadd.xlane.f32.xlu0 %v261_v45  ;;  %269 = vadd.xlane.f32.xlu1 %v250_v46  ;;  %v936_v46 = vld [vmem:[%s1075_s3] ss:$0 sm:$0xff]  ;;  %s563_s3 = sshll.u32 %s700_s2, 4  ;;  %s564_s3 = int_to_ptr.vmem [resolvable:$true] %s563_s3 }
 0x128   :  { %v894_v51 = vsub.f32 %v793_v24, %v203_v50  ;;  %v244_v24 = vsel %vm214_vm2, %v903_v55, 0.0 }
 0x129   :  { %v260_v54 = vmul.f32 %v244_v24, %v244_v24 }
 0x12a   :  { %v238_v53 = vsel %vm214_vm2, %v894_v51, 0.0 }
 0x12b   :  { %v254_v22 = vmul.f32 %v238_v53, %v238_v53 }
 0x12d   :  { %277 = vadd.xlane.f32.xlu2 %v254_v22 }
 0x12e   :  { %293 = vadd.xlane.f32.xlu1 %v262_v56 }
 0x135   :  { %289 = vadd.xlane.f32.xlu2 %v260_v54 }
 0x171   :  { %v272_v57 = vpop.xlane.xlu2 %271  ;;  %v264_v58 = vpop.xlane.xlu1 %263 }
 0x172   :  { %v299_v61 = vmul.f32 %v272_v57, %v796_v32  ;;  %v295_v62 = vmul.f32 %v264_v58, %v796_v32 }
 0x174   :  { %v315_v63 = vadd.f32 1e-05, %v299_v61  ;;  %v311_v0 = vadd.f32 1e-05, %v295_v62 }
 0x176   :  { %641 = vrsqrt.f32 %v315_v63  ;;  %vm373_vm5 = vweird.f32 %v315_v63  ;;  %vm333_vm7 = vweird.f32 %v311_v0 }
 0x177   :  { %643 = vrsqrt.f32 %v311_v0 }
 0x179   :  { %v280_v15 = vpop.xlane.xlu0 %279  ;;  %v288_v1 = vpop.xlane.xlu1 %287 }
 0x17a   :  { %v303_v2 = vmul.f32 %v280_v15, %v796_v32  ;;  %v307_v3 = vmul.f32 %v288_v1, %v796_v32 }
 0x17c   :  { %v642_v33 = vpop.eup %641  ;;  %v912_v4 = vadd.f32 1e-05, %v303_v2  ;;  %v914_v7 = vadd.f32 1e-05, %v307_v3 }
 0x17d   :  { %v644_v8 = vpop.eup %643  ;;  %v368_v9 = vmul.f32 %v642_v33, %v315_v63  ;;  %vm374_vm3 = vweird.f32 %v642_v33 }
 0x17e   :  { %v328_v10 = vmul.f32 %v644_v8, %v311_v0  ;;  %645 = vrsqrt.f32 %v912_v4  ;;  %vm334_vm4 = vweird.f32 %v644_v8  ;;  %vm375_vm6 = vmor %vm373_vm5, %vm374_vm3  ;;  %vm413_vm11 = vweird.f32 %v912_v4 }
 0x17f   :  { %v369_v11 = vmul.f32 %v642_v33, %v368_v9  ;;  %647 = vrsqrt.f32 %v914_v7  ;;  %vm335_vm8 = vmor %vm333_vm7, %vm334_vm4  ;;  %vm453_vm13 = vweird.f32 %v914_v7 }
 0x180   :  { %v329_v12 = vmul.f32 %v644_v8, %v328_v10 }
 0x181   :  { %v370_v13 = vmul.f32 0.5, %v369_v11  ;;  %v266_v16 = vpop.xlane.xlu2 %265  ;;  %v274_v17 = vpop.xlane.xlu0 %273 }
 0x182   :  { %v330_v14 = vmul.f32 0.5, %v329_v12  ;;  %v296_v28 = vmul.f32 %v266_v16, %v796_v32  ;;  %v300_v29 = vmul.f32 %v274_v17, %v796_v32 }
 0x183   :  { %v371_v30 = vsub.f32 1.5, %v370_v13 }
 0x184   :  { %v646_v20 = vpop.eup %645  ;;  %v331_v31 = vsub.f32 1.5, %v330_v14  ;;  %v920_v34 = vadd.f32 1e-05, %v296_v28  ;;  %v922_v18 = vadd.f32 1e-05, %v300_v29 }
 0x185   :  { %v648_v35 = vpop.eup %647  ;;  %v372_v21 = vmul.f32 %v642_v33, %v371_v30  ;;  %v408_v36 = vmul.f32 %v646_v20, %v912_v4  ;;  %vm414_vm9 = vweird.f32 %v646_v20 }
 0x186   :  { %v332_v42 = vmul.f32 %v644_v8, %v331_v31  ;;  %v448_v43 = vmul.f32 %v648_v35, %v914_v7  ;;  %649 = vrsqrt.f32 %v920_v34  ;;  %vm454_vm10 = vweird.f32 %v648_v35  ;;  %vm415_vm12 = vmor %vm413_vm11, %vm414_vm9 }
 0x187   :  { %v376_v44 = vsel %vm375_vm6, %v642_v33, %v372_v21  ;;  %v409_v45 = vmul.f32 %v646_v20, %v408_v36  ;;  %651 = vrsqrt.f32 %v922_v18  ;;  %vm455_vm14 = vmor %vm453_vm13, %vm454_vm10  ;;  %vm343_vm15 = vweird.f32 %v920_v34 }
 0x188   :  { %v491_v19 = vmul.f32 %v376_v44, %v803_v38  ;;  %v336_v50 = vsel %vm335_vm8, %v644_v8, %v332_v42  ;;  %v449_v23 = vmul.f32 %v648_v35, %v448_v43  ;;  %vm383_vm3 = vweird.f32 %v922_v18 }
 0x189   :  { %v487_v52 = vmul.f32 %v336_v50, %v805_v39  ;;  %v410_v53 = vmul.f32 0.5, %v409_v45  ;;  %v268_v22 = vpop.xlane.xlu0 %267  ;;  %v282_v56 = vpop.xlane.xlu1 %281 }
 0x18a   :  { %v511_v24 = vmul.f32 %v928_v37, %v491_v19  ;;  %v450_v54 = vmul.f32 0.5, %v449_v23  ;;  %v297_v57 = vmul.f32 %v268_v22, %v796_v32  ;;  %v304_v58 = vmul.f32 %v282_v56, %v796_v32 }
 0x18b   :  { %v507_v61 = vmul.f32 %v928_v37, %v487_v52  ;;  %v411_v62 = vsub.f32 1.5, %v410_v53 }
 0x18c   :  { %v650_v38 = vpop.eup %649  ;;  %v531_v63 = vadd.f32 %v936_v46, %v511_v24  ;;  %v451_v0 = vsub.f32 1.5, %v450_v54  ;;  %v945_v39 = vadd.f32 1e-05, %v297_v57  ;;  %v947_v15 = vadd.f32 1e-05, %v304_v58 }
 0x18d   :  { %v652_v1 = vpop.eup %651  ;;  %v527_v2 = vadd.f32 %v936_v46, %v507_v61  ;;  %v412_v3 = vmul.f32 %v646_v20, %v411_v62  ;;  %v338_v33 = vmul.f32 %v650_v38, %v920_v34  ;;  %vm344_vm0 = vweird.f32 %v650_v38 }
 0x18e   :  { %547 = vst [vmem:[#allocation2 + $0x20] sm:$0xff] %v531_v63  ;;  %v452_v8 = vmul.f32 %v648_v35, %v451_v0  ;;  %v378_v9 = vmul.f32 %v652_v1, %v922_v18  ;;  %653 = vrsqrt.f32 %v945_v39  ;;  %vm384_vm1 = vweird.f32 %v652_v1  ;;  %vm345_vm2 = vmor %vm343_vm15, %vm344_vm0 }
 0x18f   :  { %543 = vst [vmem:[#allocation2] sm:$0xff] %v527_v2  ;;  %v416_v10 = vsel %vm415_vm12, %v646_v20, %v412_v3  ;;  %v339_v11 = vmul.f32 %v650_v38, %v338_v33  ;;  %655 = vrsqrt.f32 %v947_v15  ;;  %vm385_vm4 = vmor %vm383_vm3, %vm384_vm1  ;;  %vm353_vm7 = vweird.f32 %v945_v39 }
 0x190   :  { %v495_v4 = vmul.f32 %v416_v10, %v815_v48  ;;  %v456_v12 = vsel %vm455_vm14, %v648_v35, %v452_v8  ;;  %v379_v13 = vmul.f32 %v652_v1, %v378_v9  ;;  %v284_v16 = vpop.xlane.xlu2 %283  ;;  %vm423_vm9 = vweird.f32 %v947_v15 }
 0x191   :  { %v499_v17 = vmul.f32 %v456_v12, %v817_v49  ;;  %v340_v14 = vmul.f32 0.5, %v339_v11  ;;  %v305_v7 = vmul.f32 %v284_v16, %v796_v32  ;;  %v286_v28 = vpop.xlane.xlu0 %285  ;;  %v276_v29 = vpop.xlane.xlu1 %275 }
 0x192   :  { %v515_v30 = vmul.f32 %v928_v37, %v495_v4  ;;  %v380_v20 = vmul.f32 0.5, %v379_v13  ;;  %v306_v31 = vmul.f32 %v286_v28, %v796_v32  ;;  %v301_v21 = vmul.f32 %v276_v29, %v796_v32 }
 0x193   :  { %v519_v48 = vmul.f32 %v928_v37, %v499_v17  ;;  %v341_v35 = vsub.f32 1.5, %v340_v14  ;;  %v965_v36 = vadd.f32 1e-05, %v305_v7 }
 0x194   :  { %v654_v49 = vpop.eup %653  ;;  %v535_v42 = vadd.f32 %v936_v46, %v515_v30  ;;  %v381_v43 = vsub.f32 1.5, %v380_v20  ;;  %v968_v44 = vadd.f32 1e-05, %v306_v31  ;;  %v972_v52 = vadd.f32 1e-05, %v301_v21 }
 0x195   :  { %v656_v45 = vpop.eup %655  ;;  %v539_v19 = vadd.f32 %v936_v46, %v519_v48  ;;  %v342_v50 = vmul.f32 %v650_v38, %v341_v35  ;;  %v348_v23 = vmul.f32 %v654_v49, %v945_v39  ;;  %657 = vrsqrt.f32 %v965_v36 }
 0x196   :  { %551 = vst [vmem:[#allocation2 + $0x40] sm:$0xff] %v535_v42  ;;  %v382_v53 = vmul.f32 %v652_v1, %v381_v43  ;;  %v418_v22 = vmul.f32 %v656_v45, %v947_v15  ;;  %659 = vrsqrt.f32 %v968_v44  ;;  %vm354_vm5 = vweird.f32 %v654_v49 }
 0x197   :  { %555 = vst [vmem:[#allocation2 + $0x60] sm:$0xff] %v539_v19  ;;  %v346_v56 = vsel %vm345_vm2, %v650_v38, %v342_v50  ;;  %v349_v24 = vmul.f32 %v654_v49, %v348_v23  ;;  %661 = vrsqrt.f32 %v972_v52  ;;  %vm424_vm6 = vweird.f32 %v656_v45  ;;  %vm355_vm8 = vmor %vm353_vm7, %vm354_vm5 }
 0x198   :  { %v488_v54 = vmul.f32 %v346_v56, %v830_v60  ;;  %v386_v57 = vsel %vm385_vm4, %v652_v1, %v382_v53  ;;  %v419_v58 = vmul.f32 %v656_v45, %v418_v22  ;;  %vm425_vm10 = vmor %vm423_vm9, %vm424_vm6  ;;  %vm433_vm11 = vweird.f32 %v965_v36 }
 0x199   :  { %v492_v34 = vmul.f32 %v386_v57, %v827_v59  ;;  %v350_v61 = vmul.f32 0.5, %v349_v24  ;;  %v292_v18 = vpop.xlane.xlu0 %291  ;;  %v270_v62 = vpop.xlane.xlu1 %269  ;;  %vm443_vm12 = vweird.f32 %v968_v44  ;;  %vm393_vm2 = vweird.f32 %v972_v52 }
 0x19a   :  { %v508_v63 = vmul.f32 %v928_v37, %v488_v54  ;;  %v420_v0 = vmul.f32 0.5, %v419_v58  ;;  %v309_v38 = vmul.f32 %v292_v18, %v796_v32  ;;  %v298_v2 = vmul.f32 %v270_v62, %v796_v32 }
 0x19b   :  { %v512_v3 = vmul.f32 %v928_v37, %v492_v34  ;;  %v351_v33 = vsub.f32 1.5, %v350_v61  ;;  %v988_v60 = vpop.eup %657 }
 0x19c   :  { %v528_v59 = vadd.f32 %v936_v46, %v508_v63  ;;  %v421_v1 = vsub.f32 1.5, %v420_v0  ;;  %v991_v8 = vadd.f32 1e-05, %v309_v38  ;;  %v993_v9 = vadd.f32 1e-05, %v298_v2  ;;  %v995_v10 = vpop.eup %659 }
 0x19d   :  { %v532_v11 = vadd.f32 %v936_v46, %v512_v3  ;;  %v352_v4 = vmul.f32 %v654_v49, %v351_v33  ;;  %v428_v12 = vmul.f32 %v988_v60, %v965_v36  ;;  %v438_v16 = vmul.f32 %v995_v10, %v968_v44  ;;  %v662_v17 = vpop.eup %661 }
 0x19e   :  { %544 = vst [vmem:[#allocation2 + $0x8] sm:$0xff] %v528_v59  ;;  %v422_v13 = vmul.f32 %v656_v45, %v421_v1  ;;  %663 = vrsqrt.f32 %v991_v8  ;;  %v388_v15 = vmul.f32 %v662_v17, %v972_v52  ;;  %vm434_vm13 = vweird.f32 %v988_v60 }
 0x19f   :  { %548 = vst [vmem:[#allocation2 + $0x28] sm:$0xff] %v532_v11  ;;  %v356_v14 = vsel %vm355_vm8, %v654_v49, %v352_v4  ;;  %v429_v39 = vmul.f32 %v988_v60, %v428_v12  ;;  %665 = vrsqrt.f32 %v993_v9  ;;  %v439_v29 = vmul.f32 %v995_v10, %v438_v16  ;;  %vm435_vm15 = vmor %vm433_vm11, %vm434_vm13 }
 0x1a0   :  { %v489_v7 = vmul.f32 %v356_v14, %v841_v5  ;;  %v426_v28 = vsel %vm425_vm10, %v656_v45, %v422_v13  ;;  %v278_v30 = vpop.xlane.xlu2 %277  ;;  %v389_v35 = vmul.f32 %v662_v17, %v388_v15  ;;  %vm444_vm14 = vweird.f32 %v995_v10 }
 0x1a1   :  { %v496_v20 = vmul.f32 %v426_v28, %v844_v6  ;;  %v430_v31 = vmul.f32 0.5, %v429_v39  ;;  %v440_v48 = vmul.f32 0.5, %v439_v29  ;;  %v302_v49 = vmul.f32 %v278_v30, %v796_v32  ;;  %v294_v5 = vpop.xlane.xlu1 %293  ;;  %vm445_vm1 = vmor %vm443_vm12, %vm444_vm14 }
 0x1a2   :  { %v509_v21 = vmul.f32 %v928_v37, %v489_v7  ;;  %v390_v50 = vmul.f32 0.5, %v389_v35  ;;  %v310_v54 = vmul.f32 %v294_v5, %v796_v32  ;;  %vm394_vm0 = vweird.f32 %v662_v17 }
 0x1a3   :  { %v516_v42 = vmul.f32 %v928_v37, %v496_v20  ;;  %v431_v43 = vsub.f32 1.5, %v430_v31  ;;  %v441_v19 = vsub.f32 1.5, %v440_v48  ;;  %v1020_v23 = vadd.f32 1e-05, %v302_v49  ;;  %vm395_vm3 = vmor %vm393_vm2, %vm394_vm0 }
 0x1a4   :  { %v664_v6 = vpop.eup %663  ;;  %v529_v45 = vadd.f32 %v936_v46, %v509_v21  ;;  %v391_v58 = vsub.f32 1.5, %v390_v50  ;;  %v326_v33 = vadd.f32 1e-05, %v310_v54  ;;  %vm473_vm6 = vweird.f32 %v991_v8 }
 0x1a5   :  { %v666_v53 = vpop.eup %665  ;;  %v536_v22 = vadd.f32 %v936_v46, %v516_v42  ;;  %v432_v56 = vmul.f32 %v988_v60, %v431_v43  ;;  %v468_v24 = vmul.f32 %v664_v6, %v991_v8  ;;  %v442_v57 = vmul.f32 %v995_v10, %v441_v19 }
 0x1a6   :  { %545 = vst [vmem:[#allocation2 + $0x10] sm:$0xff] %v529_v45  ;;  %v358_v34 = vmul.f32 %v666_v53, %v993_v9  ;;  %667 = vrsqrt.f32 %v1020_v23  ;;  %v392_v63 = vmul.f32 %v662_v17, %v391_v58  ;;  %vm474_vm4 = vweird.f32 %v664_v6 }
 0x1a7   :  { %552 = vst [vmem:[#allocation2 + $0x48] sm:$0xff] %v536_v22  ;;  %v436_v61 = vsel %vm435_vm15, %v988_v60, %v432_v56  ;;  %v469_v18 = vmul.f32 %v664_v6, %v468_v24  ;;  %v446_v62 = vsel %vm445_vm1, %v995_v10, %v442_v57  ;;  %669 = vrsqrt.f32 %v326_v33  ;;  %vm475_vm7 = vmor %vm473_vm6, %vm474_vm4 }
 0x1a8   :  { %v497_v36 = vmul.f32 %v436_v61, %v859_v26  ;;  %v359_v0 = vmul.f32 %v666_v53, %v358_v34  ;;  %v290_v38 = vpop.xlane.xlu2 %289  ;;  %v498_v2 = vmul.f32 %v446_v62, %v856_v25  ;;  %v396_v52 = vsel %vm395_vm3, %v662_v17, %v392_v63 }
 0x1a9   :  { %v470_v3 = vmul.f32 0.5, %v469_v18  ;;  %v308_v44 = vmul.f32 %v290_v38, %v796_v32  ;;  %v493_v26 = vmul.f32 %v396_v52, %v862_v27  ;;  %vm364_vm5 = vweird.f32 %v666_v53 }
 0x1aa   :  { %v517_v60 = vmul.f32 %v928_v37, %v497_v36  ;;  %v360_v59 = vmul.f32 0.5, %v359_v0  ;;  %v518_v1 = vmul.f32 %v928_v37, %v498_v2  ;;  %vm363_vm8 = vweird.f32 %v993_v9 }
 0x1ab   :  { %v471_v10 = vsub.f32 1.5, %v470_v3  ;;  %v324_v25 = vadd.f32 1e-05, %v308_v44  ;;  %v513_v32 = vmul.f32 %v928_v37, %v493_v26  ;;  %vm365_vm9 = vmor %vm363_vm8, %vm364_vm5  ;;  %vm403_vm11 = vweird.f32 %v1020_v23 }
 0x1ac   :  { %v537_v11 = vadd.f32 %v936_v46, %v517_v60  ;;  %v361_v4 = vsub.f32 1.5, %v360_v59  ;;  %v668_v12 = vpop.eup %667  ;;  %v538_v13 = vadd.f32 %v936_v46, %v518_v1  ;;  %vm483_vm14 = vweird.f32 %v326_v33 }
 0x1ad   :  { %v472_v16 = vmul.f32 %v664_v6, %v471_v10  ;;  %v398_v27 = vmul.f32 %v668_v12, %v1020_v23  ;;  %671 = vrsqrt.f32 %v324_v25  ;;  %v533_v14 = vadd.f32 %v936_v46, %v513_v32  ;;  %v670_v8 = vpop.eup %669 }
 0x1ae   :  { %553 = vst [vmem:[#allocation2 + $0x50] sm:$0xff] %v537_v11  ;;  %v362_v17 = vmul.f32 %v666_v53, %v361_v4  ;;  %v478_v20 = vmul.f32 %v670_v8, %v326_v33  ;;  %vm404_vm10 = vweird.f32 %v668_v12  ;;  %vm484_vm13 = vweird.f32 %v670_v8 }
 0x1af   :  { %554 = vst [vmem:[#allocation2 + $0x58] sm:$0xff] %v538_v13  ;;  %v476_v39 = vsel %vm475_vm7, %v664_v6, %v472_v16  ;;  %v399_v29 = vmul.f32 %v668_v12, %v398_v27  ;;  %vm405_vm12 = vmor %vm403_vm11, %vm404_vm10  ;;  %vm463_vm1 = vweird.f32 %v324_v25 }
 0x1b0   :  { %v501_v7 = vmul.f32 %v476_v39, %v876_v40  ;;  %v366_v28 = vsel %vm365_vm9, %v666_v53, %v362_v17  ;;  %549 = vst [vmem:[#allocation2 + $0x30] sm:$0xff] %v533_v14  ;;  %v479_v49 = vmul.f32 %v670_v8, %v478_v20  ;;  %vm485_vm15 = vmor %vm483_vm14, %vm484_vm13 }
 0x1b1   :  { %v490_v15 = vmul.f32 %v366_v28, %v879_v41  ;;  %v400_v9 = vmul.f32 0.5, %v399_v29 }
 0x1b2   :  { %v521_v30 = vmul.f32 %v928_v37, %v501_v7  ;;  %v480_v41 = vmul.f32 0.5, %v479_v49 }
 0x1b3   :  { %v510_v31 = vmul.f32 %v928_v37, %v490_v15  ;;  %v672_v21 = vpop.eup %671  ;;  %v401_v35 = vsub.f32 1.5, %v400_v9 }
 0x1b4   :  { %v541_v48 = vadd.f32 %v936_v46, %v521_v30  ;;  %v458_v5 = vmul.f32 %v672_v21, %v324_v25  ;;  %v481_v45 = vsub.f32 1.5, %v480_v41  ;;  %vm464_vm0 = vweird.f32 %v672_v21 }
 0x1b5   :  { %v530_v40 = vadd.f32 %v936_v46, %v510_v31  ;;  %v402_v42 = vmul.f32 %v668_v12, %v401_v35  ;;  %vm465_vm2 = vmor %vm463_vm1, %vm464_vm0 }
 0x1b6   :  { %557 = vst [vmem:[#allocation2 + $0x70] sm:$0xff] %v541_v48  ;;  %v459_v43 = vmul.f32 %v672_v21, %v458_v5  ;;  %v482_v53 = vmul.f32 %v670_v8, %v481_v45 }
 0x1b7   :  { %546 = vst [vmem:[#allocation2 + $0x18] sm:$0xff] %v530_v40  ;;  %v406_v6 = vsel %vm405_vm12, %v668_v12, %v402_v42 }
 0x1b8   :  { %v494_v19 = vmul.f32 %v406_v6, %v894_v51  ;;  %v460_v50 = vmul.f32 0.5, %v459_v43  ;;  %v486_v24 = vsel %vm485_vm15, %v670_v8, %v482_v53 }
 0x1b9   :  { %v502_v54 = vmul.f32 %v486_v24, %v889_v47 }
 0x1ba   :  { %v514_v22 = vmul.f32 %v928_v37, %v494_v19  ;;  %v461_v56 = vsub.f32 1.5, %v460_v50 }
 0x1bb   :  { %v522_v58 = vmul.f32 %v928_v37, %v502_v54 }
 0x1bc   :  { %v534_v23 = vadd.f32 %v936_v46, %v514_v22  ;;  %v462_v57 = vmul.f32 %v672_v21, %v461_v56 }
 0x1bd   :  { %v542_v61 = vadd.f32 %v936_v46, %v522_v58 }
 0x1be   :  { %550 = vst [vmem:[#allocation2 + $0x38] sm:$0xff] %v534_v23  ;;  %v466_v51 = vsel %vm465_vm2, %v672_v21, %v462_v57 }
 0x1bf   :  { %v500_v34 = vmul.f32 %v466_v51, %v903_v55  ;;  %558 = vst [vmem:[#allocation2 + $0x78] sm:$0xff] %v542_v61 }
 0x1c1   :  { %v520_v18 = vmul.f32 %v928_v37, %v500_v34 }
 0x1c3   :  { %v540_v47 = vadd.f32 %v936_v46, %v520_v18 }
 0x1c5   :  { %556 = vst [vmem:[#allocation2 + $0x68] sm:$0xff] %v540_v47 }
 0x1c6   :  { %571 = dma.vmem_to_hbm [thread:$0]  %s564_s3, 2048, %s566_s11, [#allocation3], %s701_s12, %s701_s12, %s702_s13  }
 0x1c7   :  { %697 = dma.done.wait [#allocation3], 2048  }
 0x1c8   :  { %698 = vsyncadd [#allocation3], 4294965248 }
 0x1c9   :  { %576 = vsyncpa [#allocation3], 1 }

</bundles_post_ra>
